<compile_context>
chip_gen: v6e
topology: v6e:2x2x1
jax: 0.10.0
libtpu: 0.0.40
codegen_flags: <defaults>
</compile_context>

<pallas_src>
import jax
import jax.numpy as jnp
from jax.experimental import pallas as pl
from jax.experimental.pallas import tpu as pltpu

IN_DIM = 28 * 28   # 784 — streamed as-is (no K padding on x)
H1 = 128           # fc1 output width (already lane-dense)
H2_PAD = 128       # 64  -> 128 (zero-padded, lane-dense)
OUT_PAD = 128      # 10  -> 128 (zero-padded, lane-dense)
OUT_REAL = 10


def mlp_kernel(x_ref, w1_ref, b1_ref, w2_ref, b2_ref, w3_ref, b3_ref, o_ref):
    # x arrives as f32 straight from HBM; cast to bf16 in-kernel (VPU) so the
    # wrapper needs no extra pad/cast pass over x.
    x = x_ref[...].astype(jnp.bfloat16)                                 # (TM, 784)
    h1 = jnp.dot(x, w1_ref[...], preferred_element_type=jnp.float32)    # (TM, 128) f32
    h1 = jnp.maximum(h1 + b1_ref[...], 0.0)
    h2 = jnp.dot(h1.astype(jnp.bfloat16), w2_ref[...],
                 preferred_element_type=jnp.float32)                    # (TM, 128) f32
    h2 = jnp.maximum(h2 + b2_ref[...], 0.0)
    o = jnp.dot(h2.astype(jnp.bfloat16), w3_ref[...],
                preferred_element_type=jnp.float32)                     # (TM, 128) f32
    o_ref[...] = (o + b3_ref[...]).astype(o_ref.dtype)                  # bf16 store


def _pad2d(a, rows, cols):
    return jnp.pad(a, ((0, rows - a.shape[0]), (0, cols - a.shape[1])))


def prepare_params(params):
    """One-time setup: pad weights to lane-dense shapes, cast matmul operands
    to bf16.  Raw params are stored as (in, out) = transpose of torch layout:
      w1 (784,128) b1 (1,128) | w2 (128,64) b2 (1,64) | w3 (64,10) b3 (1,10)
    """
    w1, b1, w2, b2, w3, b3 = params
    w1p = w1.astype(jnp.bfloat16)                                       # (784, 128)
    w2p = _pad2d(w2.astype(jnp.float32), H1, H2_PAD).astype(jnp.bfloat16)
    w3p = _pad2d(w3.astype(jnp.float32), H2_PAD, OUT_PAD).astype(jnp.bfloat16)
    b1p = b1.astype(jnp.float32)                                        # (1, 128)
    b2p = _pad2d(b2.astype(jnp.float32), 1, H2_PAD)                     # (1, 128)
    b3p = _pad2d(b3.astype(jnp.float32), 1, OUT_PAD)                    # (1, 128)
    return w1p, b1p, w2p, b2p, w3p, b3p


def _choose_tm(batch):
    """Big tiles for throughput, but keep >= 2 grid steps so the parallel batch
    axis can shard across both TensorCores on v7x."""
    b128 = ((batch + 127) // 128) * 128
    if b128 <= 128:
        return 128
    tm = min(1024, b128 // 2)
    return max((tm // 128) * 128, 128)


@jax.jit
def net_forward(x_nchw, prepped_params):
    w1p, b1p, w2p, b2p, w3p, b3p = prepped_params

    B = x_nchw.shape[0]
    x2d = x_nchw.reshape(B, IN_DIM).astype(jnp.float32)   # torch .view(-1, 784)

    TM = _choose_tm(B)
    B_pad = pl.cdiv(B, TM) * TM
    # Zero-pad batch rows only (deterministic padded rows; no-op if aligned).
    x_pad = jnp.pad(x2d, ((0, B_pad - B), (0, 0)))

    grid = (B_pad // TM,)
    w_spec = lambda shape: pl.BlockSpec(shape, lambda i: (0, 0))  # VMEM-resident

    out_pad = pl.pallas_call(
        mlp_kernel,
        out_shape=jax.ShapeDtypeStruct((B_pad, OUT_PAD), jnp.bfloat16),
        grid=grid,
        in_specs=[
            pl.BlockSpec((TM, IN_DIM), lambda i: (i, 0)),   # x: streamed f32 tiles
            w_spec((IN_DIM, H1)),       w_spec((1, H1)),
            w_spec((H1, H2_PAD)),       w_spec((1, H2_PAD)),
            w_spec((H2_PAD, OUT_PAD)),  w_spec((1, OUT_PAD)),
        ],
        out_specs=pl.BlockSpec((TM, OUT_PAD), lambda i: (i, 0)),
        compiler_params=pltpu.CompilerParams(
            dimension_semantics=("parallel",),      # megacore on v7x, no-op elsewhere
            vmem_limit_bytes=32 * 1024 * 1024,
        ),
    )(x_pad, w1p, b1p, w2p, b2p, w3p, b3p)

    return out_pad[:B, :OUT_REAL].astype(jnp.float32)


def init_params(key):
    # Deterministic init mimicking nn.Linear's U(-1/sqrt(fan_in), 1/sqrt(fan_in)).
    ks = jax.random.split(key, 6)

    def linear(kw, kb, fan_in, fan_out):
        bound = 1.0 / jnp.sqrt(jnp.float32(fan_in))
        # stored as (in, out) = transpose of torch's (out, in) weight
        w = jax.random.uniform(kw, (fan_in, fan_out), jnp.float32, -bound, bound)
        b = jax.random.uniform(kb, (1, fan_out), jnp.float32, -bound, bound)
        return w, b

    w1, b1 = linear(ks[0], ks[1], IN_DIM, 128)
    w2, b2 = linear(ks[2], ks[3], 128, 64)
    w3, b3 = linear(ks[4], ks[5], 64, 10)
    return (w1, b1, w2, b2, w3, b3)


def reference_forward_f32(x_nchw, params):
    # Pure-f32 JAX reference (matches PyTorch Net numerics).
    w1, b1, w2, b2, w3, b3 = params
    x = x_nchw.reshape(x_nchw.shape[0], -1).astype(jnp.float32)
    h1 = jnp.maximum(x @ w1 + b1, 0.0)
    h2 = jnp.maximum(h1 @ w2 + b2, 0.0)
    return h2 @ w3 + b3


def reference_forward_bf16(x_nchw, params):
    # Reference with the same bf16-operand / f32-accumulate numerics as the kernel.
    w1, b1, w2, b2, w3, b3 = params
    bf = jnp.bfloat16
    x = x_nchw.reshape(x_nchw.shape[0], -1).astype(jnp.float32)
    h1 = jnp.dot(x.astype(bf), w1.astype(bf), preferred_element_type=jnp.float32) + b1
    h1 = jnp.maximum(h1, 0.0)
    h2 = jnp.dot(h1.astype(bf), w2.astype(bf), preferred_element_type=jnp.float32) + b2
    h2 = jnp.maximum(h2, 0.0)
    return jnp.dot(h2.astype(bf), w3.astype(bf), preferred_element_type=jnp.float32) + b3


if __name__ == "__main__":
    key = jax.random.PRNGKey(0)
    k_x, k_p = jax.random.split(key)

    B = 2
    x = jax.random.normal(k_x, (B, 1, 28, 28), dtype=jnp.float32)  # NCHW like MNIST
    params = init_params(k_p)
    prepped = prepare_params(params)   # one-time weight pad + bf16 cast (hoisted)

    out = net_forward(x, prepped)
    out = jax.block_until_ready(out)
    assert out.shape == (B, 10), out.shape

    # Matched-numerics check (bf16 operands, f32 accumulation; output rounded
    # to bf16 by the kernel store -> slightly looser than exact).
    ref_bf16 = reference_forward_bf16(x, params)
    assert jnp.allclose(out, ref_bf16, atol=1e-2, rtol=1e-2), "mismatch vs bf16 reference"

    # Loose sanity check vs the pure-f32 (PyTorch-equivalent) reference.
    ref_f32 = reference_forward_f32(x, params)
    assert jnp.allclose(out, ref_f32, atol=6e-2, rtol=6e-2), "mismatch vs f32 reference"

    print("KERNEL_OK")
</pallas_src>

<mosaic_0001>
module attributes {stable_mosaic.version = 11 : i64} {
  func.func @mlp_kernel(%arg0: i32, %arg1: memref<128x784xf32, #tpu.memory_space<vmem>>, %arg2: memref<784x128xbf16, #tpu.memory_space<vmem>>, %arg3: memref<1x128xf32, #tpu.memory_space<vmem>>, %arg4: memref<128x128xbf16, #tpu.memory_space<vmem>>, %arg5: memref<1x128xf32, #tpu.memory_space<vmem>>, %arg6: memref<128x128xbf16, #tpu.memory_space<vmem>>, %arg7: memref<1x128xf32, #tpu.memory_space<vmem>>, %arg8: memref<128x128xbf16, #tpu.memory_space<vmem>>) attributes {dimension_semantics = [#tpu.dimension_semantics<parallel>], iteration_bounds = array<i64: 1>, scalar_prefetch = 0 : i64, scratch_operands = 0 : i64, tpu.core_type = #tpu.core_type<tc>, window_params = [{transform_indices = @transform_0, window_bounds = array<i64: 128, 784>}, {pipeline_mode = #tpu.pipeline_mode<synchronous>, transform_indices = @transform_1, window_bounds = array<i64: 784, 128>}, {pipeline_mode = #tpu.pipeline_mode<synchronous>, transform_indices = @transform_2, window_bounds = array<i64: 1, 128>}, {pipeline_mode = #tpu.pipeline_mode<synchronous>, transform_indices = @transform_3, window_bounds = array<i64: 128, 128>}, {pipeline_mode = #tpu.pipeline_mode<synchronous>, transform_indices = @transform_4, window_bounds = array<i64: 1, 128>}, {pipeline_mode = #tpu.pipeline_mode<synchronous>, transform_indices = @transform_5, window_bounds = array<i64: 128, 128>}, {pipeline_mode = #tpu.pipeline_mode<synchronous>, transform_indices = @transform_6, window_bounds = array<i64: 1, 128>}, {transform_indices = @transform_7, window_bounds = array<i64: 128, 128>}]} {
    %c0 = arith.constant 0 : index
    %c0_0 = arith.constant 0 : index
    %0 = vector.load %arg1[%c0, %c0_0] : memref<128x784xf32, #tpu.memory_space<vmem>>, vector<128x784xf32>
    %1 = arith.truncf %0 : vector<128x784xf32> to vector<128x784xbf16>
    %c0_1 = arith.constant 0 : index
    %c0_2 = arith.constant 0 : index
    %2 = vector.load %arg2[%c0_1, %c0_2] : memref<784x128xbf16, #tpu.memory_space<vmem>>, vector<784x128xbf16>
    %cst = arith.constant dense<0.000000e+00> : vector<128x128xf32>
    %3 = tpu.matmul %1, %2, %cst {dimension_numbers = #tpu.dot_dimension_numbers<[1], [0], [0], [1], [0, 0, 1, 1], [], []>} : vector<128x784xbf16>, vector<784x128xbf16>, vector<128x128xf32> -> vector<128x128xf32>
    %c0_3 = arith.constant 0 : index
    %c0_4 = arith.constant 0 : index
    %4 = vector.load %arg3[%c0_3, %c0_4] : memref<1x128xf32, #tpu.memory_space<vmem>>, vector<1x128xf32>
    %5 = vector.broadcast %4 : vector<1x128xf32> to vector<128x128xf32>
    %6 = arith.addf %3, %5 : vector<128x128xf32>
    %cst_5 = arith.constant 0.000000e+00 : f32
    %7 = vector.broadcast %cst_5 : f32 to vector<128x128xf32>
    %8 = arith.maximumf %6, %7 : vector<128x128xf32>
    %9 = arith.truncf %8 : vector<128x128xf32> to vector<128x128xbf16>
    %c0_6 = arith.constant 0 : index
    %c0_7 = arith.constant 0 : index
    %10 = vector.load %arg4[%c0_6, %c0_7] : memref<128x128xbf16, #tpu.memory_space<vmem>>, vector<128x128xbf16>
    %cst_8 = arith.constant dense<0.000000e+00> : vector<128x128xf32>
    %11 = tpu.matmul %9, %10, %cst_8 {dimension_numbers = #tpu.dot_dimension_numbers<[1], [0], [0], [1], [0, 0, 1, 1], [], []>} : vector<128x128xbf16>, vector<128x128xbf16>, vector<128x128xf32> -> vector<128x128xf32>
    %c0_9 = arith.constant 0 : index
    %c0_10 = arith.constant 0 : index
    %12 = vector.load %arg5[%c0_9, %c0_10] : memref<1x128xf32, #tpu.memory_space<vmem>>, vector<1x128xf32>
    %13 = vector.broadcast %12 : vector<1x128xf32> to vector<128x128xf32>
    %14 = arith.addf %11, %13 : vector<128x128xf32>
    %cst_11 = arith.constant 0.000000e+00 : f32
    %15 = vector.broadcast %cst_11 : f32 to vector<128x128xf32>
    %16 = arith.maximumf %14, %15 : vector<128x128xf32>
    %17 = arith.truncf %16 : vector<128x128xf32> to vector<128x128xbf16>
    %c0_12 = arith.constant 0 : index
    %c0_13 = arith.constant 0 : index
    %18 = vector.load %arg6[%c0_12, %c0_13] : memref<128x128xbf16, #tpu.memory_space<vmem>>, vector<128x128xbf16>
    %cst_14 = arith.constant dense<0.000000e+00> : vector<128x128xf32>
    %19 = tpu.matmul %17, %18, %cst_14 {dimension_numbers = #tpu.dot_dimension_numbers<[1], [0], [0], [1], [0, 0, 1, 1], [], []>} : vector<128x128xbf16>, vector<128x128xbf16>, vector<128x128xf32> -> vector<128x128xf32>
    %c0_15 = arith.constant 0 : index
    %c0_16 = arith.constant 0 : index
    %20 = vector.load %arg7[%c0_15, %c0_16] : memref<1x128xf32, #tpu.memory_space<vmem>>, vector<1x128xf32>
    %21 = vector.broadcast %20 : vector<1x128xf32> to vector<128x128xf32>
    %22 = arith.addf %19, %21 : vector<128x128xf32>
    %23 = arith.truncf %22 : vector<128x128xf32> to vector<128x128xbf16>
    %c0_17 = arith.constant 0 : index
    %c0_18 = arith.constant 0 : index
    %24 = vector.load %arg8[%c0_17, %c0_18] : memref<128x128xbf16, #tpu.memory_space<vmem>>, vector<128x128xbf16>
    tpu.vector_store %arg8[%c0_17, %c0_18], %23 {strides = array<i32>} : memref<128x128xbf16, #tpu.memory_space<vmem>>, vector<128x128xbf16>,
    return
  }
  func.func @transform_0(%arg0: i32) -> (i32, i32) {
    %c0_i32 = arith.constant 0 : i32
    %c0_i32_0 = arith.constant 0 : i32
    return %arg0, %c0_i32 : i32, i32
  }
  func.func @transform_1(%arg0: i32) -> (i32, i32) {
    %c0_i32 = arith.constant 0 : i32
    %c0_i32_0 = arith.constant 0 : i32
    %c0_i32_1 = arith.constant 0 : i32
    return %c0_i32, %c0_i32_0 : i32, i32
  }
  func.func @transform_2(%arg0: i32) -> (i32, i32) {
    %c0_i32 = arith.constant 0 : i32
    %c0_i32_0 = arith.constant 0 : i32
    %c0_i32_1 = arith.constant 0 : i32
    return %c0_i32, %c0_i32_0 : i32, i32
  }
  func.func @transform_3(%arg0: i32) -> (i32, i32) {
    %c0_i32 = arith.constant 0 : i32
    %c0_i32_0 = arith.constant 0 : i32
    %c0_i32_1 = arith.constant 0 : i32
    return %c0_i32, %c0_i32_0 : i32, i32
  }
  func.func @transform_4(%arg0: i32) -> (i32, i32) {
    %c0_i32 = arith.constant 0 : i32
    %c0_i32_0 = arith.constant 0 : i32
    %c0_i32_1 = arith.constant 0 : i32
    return %c0_i32, %c0_i32_0 : i32, i32
  }
  func.func @transform_5(%arg0: i32) -> (i32, i32) {
    %c0_i32 = arith.constant 0 : i32
    %c0_i32_0 = arith.constant 0 : i32
    %c0_i32_1 = arith.constant 0 : i32
    return %c0_i32, %c0_i32_0 : i32, i32
  }
  func.func @transform_6(%arg0: i32) -> (i32, i32) {
    %c0_i32 = arith.constant 0 : i32
    %c0_i32_0 = arith.constant 0 : i32
    %c0_i32_1 = arith.constant 0 : i32
    return %c0_i32, %c0_i32_0 : i32, i32
  }
  func.func @transform_7(%arg0: i32) -> (i32, i32) {
    %c0_i32 = arith.constant 0 : i32
    %c0_i32_0 = arith.constant 0 : i32
    return %arg0, %c0_i32 : i32, i32
  }
}

</mosaic_0001>

<bundles_post_ra>
// kernel: net_forward.1
= control target key start
LH: loop header
LB: loop body
LE: loop exit
PB: predicated region body
PF: predicated region fallthrough
CT: control target
= control target key end

     0   :  { %vm594_vm0 = vcmask 130048   ;;  %s2794_s1 = inlined_call_operand.vmem [shape: bf16[784,128], index: 1, kind: input, shape index: {}]   ;;  %s2795_s0 = inlined_call_operand.vmem [shape: f32[128,784], index: 0, kind: input, shape index: {}]   ;;  %s2796_s3 = inlined_call_operand.vmem [shape: bf16[128,128], index: 3, kind: input, shape index: {}]   ;;  %s2797_s2 = inlined_call_operand.vmem [shape: f32[1,128], index: 2, kind: input, shape index: {}]   ;;  %s2798_s5 = inlined_call_operand.vmem [shape: bf16[128,128], index: 5, kind: input, shape index: {}]   ;;  %s2799_s4 = inlined_call_operand.vmem [shape: f32[1,128], index: 4, kind: input, shape index: {}]   ;;  %s2800_s6 = inlined_call_operand.vmem [shape: f32[1,128], index: 6, kind: input, shape index: {}]   ;;  %s2801_s7 = inlined_call_operand.vmem [shape: bf16[128,128], index: 7, kind: output, shape index: {}]  }
   0x1   :  { %v1961_v0 = vld [vmem:[%s2794_s1 + $0x78] sm:$0xff]   ;;  %v1965_v4 = vld [vmem:[%s2794_s1 + $0x70] sm:$0xff]   ;;  %v1969_v8 = vld [vmem:[%s2794_s1 + $0x68] sm:$0xff]  }
   0x2   :  { %v1962_v1 = vld [vmem:[%s2794_s1 + $0xf8] sm:$0xff]   ;;  %1630 = vmatprep.subr.bf16.mxu0 %v1961_v0  ;;  %v1966_v5 = vld [vmem:[%s2794_s1 + $0xf0] sm:$0xff]   ;;  %v1970_v9 = vld [vmem:[%s2794_s1 + $0xe8] sm:$0xff]  }
   0x3   :  { %v1963_v2 = vld [vmem:[%s2794_s1 + $0x38] sm:$0xff]   ;;  %1694 = vmatprep.subr.bf16.mxu1 %v1962_v1  ;;  %v1967_v6 = vld [vmem:[%s2794_s1 + $0x30] sm:$0xff]   ;;  %v1971_v10 = vld [vmem:[%s2794_s1 + $0x28] sm:$0xff]  }
   0x4   :  { %v1964_v3 = vld [vmem:[%s2794_s1 + $0xb8] sm:$0xff]   ;;  %1631 = vmatpush3.bf16.msra.mxu0 %v1963_v2  ;;  %v1968_v7 = vld [vmem:[%s2794_s1 + $0xb0] sm:$0xff]   ;;  %v1972_v11 = vld [vmem:[%s2794_s1 + $0xa8] sm:$0xff]  }
   0x5   :  { %1695 = vmatpush3.bf16.msra.mxu1 %v1964_v3  ;;  %1632 = vmatprep.subr.bf16.mxu0 %v1965_v4  ;;  %v1973_v12 = vld [vmem:[%s2794_s1 + $0x60] sm:$0xff]   ;;  %v1977_v16 = vld [vmem:[%s2794_s1 + $0x58] sm:$0xff]   ;;  %v1981_v20 = vld [vmem:[%s2794_s1 + $0x50] sm:$0xff]  }
   0x6   :  { %1696 = vmatprep.subr.bf16.mxu1 %v1966_v5  ;;  %v1974_v13 = vld [vmem:[%s2794_s1 + $0xe0] sm:$0xff]   ;;  %v1978_v17 = vld [vmem:[%s2794_s1 + $0xd8] sm:$0xff]   ;;  %v1982_v21 = vld [vmem:[%s2794_s1 + $0xd0] sm:$0xff]  }
   0x7   :  { %v1975_v14 = vld [vmem:[%s2794_s1 + $0x20] sm:$0xff]   ;;  %v1979_v18 = vld [vmem:[%s2794_s1 + $0x18] sm:$0xff]   ;;  %v1983_v22 = vld [vmem:[%s2794_s1 + $0x10] sm:$0xff]  }
   0x8   :  { %1633 = vmatpush3.bf16.msra.mxu0 %v1967_v6  ;;  %v1976_v15 = vld [vmem:[%s2794_s1 + $0xa0] sm:$0xff]   ;;  %v1980_v19 = vld [vmem:[%s2794_s1 + $0x98] sm:$0xff]   ;;  %v1984_v23 = vld [vmem:[%s2794_s1 + $0x90] sm:$0xff]  }
   0x9   :  { %1697 = vmatpush3.bf16.msra.mxu1 %v1968_v7  ;;  %1634 = vmatprep.subr.bf16.mxu0 %v1969_v8  ;;  %v1985_v24 = vld [vmem:[%s2794_s1 + $0x48] sm:$0xff]   ;;  %v1989_v28 = vld [vmem:[%s2794_s1 + $0x40] sm:$0xff]   ;;  %v30_v34 = vld [vmem:[%s2795_s0 + $0x18] sm:$0xff] }
   0xa   :  { %1698 = vmatprep.subr.bf16.mxu1 %v1970_v9  ;;  %v1986_v25 = vld [vmem:[%s2794_s1 + $0xc8] sm:$0xff]   ;;  %v1990_v29 = vld [vmem:[%s2794_s1 + $0xc0] sm:$0xff]   ;;  %v37_v36 = vld [vmem:[%s2795_s0 + $0x50] sm:$0xff] }
   0xb   :  { %v1987_v26 = vld [vmem:[%s2794_s1 + $0x8] sm:$0xff]   ;;  %v1991_v30 = vld [vmem:[%s2794_s1] sm:$0xff]   ;;  %v34_v38 = vld [vmem:[%s2795_s0 + $0x38] sm:$0xff]  ;;  %v142_v39 = vpack.c.bf16 %v37_v36, %v30_v34 }
   0xc   :  { %1635 = vmatpush3.bf16.msra.mxu0 %v1971_v10  ;;  %v1988_v27 = vld [vmem:[%s2794_s1 + $0x88] sm:$0xff]   ;;  %v1992_v31 = vld [vmem:[%s2794_s1 + $0x80] sm:$0xff]   ;;  %v29_v41 = vld [vmem:[%s2795_s0 + $0x10] sm:$0xff] }
   0xd   :  { %1699 = vmatpush3.bf16.msra.mxu1 %v1972_v11  ;;  %1636 = vmatprep.subr.bf16.mxu0 %v1973_v12  ;;  %v28_v32 = vld [vmem:[%s2795_s0 + $0x8] sm:$0xff]  ;;  %v35_v33 = vld [vmem:[%s2795_s0 + $0x40] sm:$0xff]  ;;  %v1993_v44 = vld [vmem:[%s2794_s1 + $0x178] sm:$0xff]  }
   0xe   :  { %1700 = vmatprep.subr.bf16.mxu1 %v1974_v13  ;;  %v140_v35 = vpack.c.bf16 %v35_v33, %v28_v32  ;;  %v27_v37 = vld [vmem:[%s2795_s0] sm:$0xff]  ;;  %v36_v42 = vld [vmem:[%s2795_s0 + $0x48] sm:$0xff]  ;;  %748 = vmatprep.mubr.bf16.mxu1 %v142_v39  ;;  %v1994_v45 = vld [vmem:[%s2794_s1 + $0x138] sm:$0xff]  }
   0xf   :  { %v139_v40 = vpack.c.bf16 %v34_v38, %v27_v37  ;;  %v141_v43 = vpack.c.bf16 %v36_v42, %v29_v41  ;;  %v42_v46 = vld [vmem:[%s2795_s0 + $0x78] sm:$0xff]  ;;  %v49_v47 = vld [vmem:[%s2795_s0 + $0xb0] sm:$0xff]  ;;  %v44_v48 = vld [vmem:[%s2795_s0 + $0x88] sm:$0xff] }
  0x10   :  { %1637 = vmatpush3.bf16.msra.mxu0 %v1975_v14  ;;  %651 = vmatprep.mubr.bf16.mxu0 %v140_v35  ;;  %v51_v49 = vld [vmem:[%s2795_s0 + $0xc0] sm:$0xff]  ;;  %v147_v50 = vpack.c.bf16 %v49_v47, %v42_v46  ;;  %v41_v52 = vld [vmem:[%s2795_s0 + $0x70] sm:$0xff]  ;;  %v48_v53 = vld [vmem:[%s2795_s0 + $0xa8] sm:$0xff] }
  0x11   :  { %1701 = vmatpush3.bf16.msra.mxu1 %v1976_v15  ;;  %1638 = vmatprep.subr.bf16.mxu0 %v1977_v16  ;;  %v149_v51 = vpack.c.bf16 %v51_v49, %v44_v48  ;;  %v43_v54 = vld [vmem:[%s2795_s0 + $0x80] sm:$0xff]  ;;  %v50_v55 = vld [vmem:[%s2795_s0 + $0xb8] sm:$0xff]  ;;  %v146_v56 = vpack.c.bf16 %v48_v53, %v41_v52  ;;  %v1995_v57 = vld [vmem:[%s2794_s1 + $0x170] sm:$0xff]  }
  0x12   :  { %1702 = vmatprep.subr.bf16.mxu1 %v1978_v17  ;;  %v148_v58 = vpack.c.bf16 %v50_v55, %v43_v54  ;;  %v1996_v59 = vld [vmem:[%s2794_s1 + $0x130] sm:$0xff]   ;;  %v56_v60 = vld [vmem:[%s2795_s0 + $0xe8] sm:$0xff]  ;;  %v63_v61 = vld [vmem:[%s2795_s0 + $0x120] sm:$0xff] }
  0x13   :  { %v154_v62 = vpack.c.bf16 %v63_v61, %v56_v60  ;;  %v58_v63 = vld [vmem:[%s2795_s0 + $0xf8] sm:$0xff]  ;;  %v65_v0 = vld [vmem:[%s2795_s0 + $0x130] sm:$0xff]  ;;  %v55_v2 = vld [vmem:[%s2795_s0 + $0xe0] sm:$0xff] }
  0x14   :  { %1639 = vmatpush3.bf16.msra.mxu0 %v1979_v18  ;;  %v156_v1 = vpack.c.bf16 %v65_v0, %v58_v63  ;;  %v62_v3 = vld [vmem:[%s2795_s0 + $0x118] sm:$0xff]  ;;  %v57_v4 = vld [vmem:[%s2795_s0 + $0xf0] sm:$0xff]  ;;  %v1997_v5 = vld [vmem:[%s2794_s1 + $0x168] sm:$0xff]  }
  0x15   :  { %1703 = vmatpush3.bf16.msra.mxu1 %v1980_v19  ;;  %1640 = vmatprep.subr.bf16.mxu0 %v1981_v20  ;;  %v1998_v6 = vld [vmem:[%s2794_s1 + $0x128] sm:$0xff]   ;;  %v70_v8 = vld [vmem:[%s2795_s0 + $0x158] sm:$0xff]  ;;  %v77_v9 = vld [vmem:[%s2795_s0 + $0x190] sm:$0xff]  ;;  %v153_v12 = vpack.c.bf16 %v62_v3, %v55_v2 }
  0x16   :  { %1704 = vmatprep.subr.bf16.mxu1 %v1982_v21  ;;  %v64_v7 = vld [vmem:[%s2795_s0 + $0x128] sm:$0xff]  ;;  %v79_v11 = vld [vmem:[%s2795_s0 + $0x1a0] sm:$0xff]  ;;  %v161_v14 = vpack.c.bf16 %v77_v9, %v70_v8  ;;  %v69_v18 = vld [vmem:[%s2795_s0 + $0x150] sm:$0xff] }
  0x17   :  { %v72_v10 = vld [vmem:[%s2795_s0 + $0x168] sm:$0xff]  ;;  %v155_v13 = vpack.c.bf16 %v64_v7, %v57_v4  ;;  %v1999_v15 = vld [vmem:[%s2794_s1 + $0x160] sm:$0xff]   ;;  %v78_v21 = vld [vmem:[%s2795_s0 + $0x198] sm:$0xff] }
  0x18   :  { %1641 = vmatpush3.bf16.msra.mxu0 %v1983_v22  ;;  %v163_v16 = vpack.c.bf16 %v79_v11, %v72_v10  ;;  %v2000_v17 = vld [vmem:[%s2794_s1 + $0x120] sm:$0xff]   ;;  %v76_v19 = vld [vmem:[%s2795_s0 + $0x188] sm:$0xff]  ;;  %v2003_v32 = vld [vmem:[%s2794_s1 + $0x150] sm:$0xff]  }
  0x19   :  { %1705 = vmatpush3.bf16.msra.mxu1 %v1984_v23  ;;  %1642 = vmatprep.subr.bf16.mxu0 %v1985_v24  ;;  %v71_v20 = vld [vmem:[%s2795_s0 + $0x160] sm:$0xff]  ;;  %v84_v22 = vld [vmem:[%s2795_s0 + $0x1c8] sm:$0xff]  ;;  %v2001_v24 = vld [vmem:[%s2794_s1 + $0x158] sm:$0xff]  }
  0x1a   :  { %1706 = vmatprep.subr.bf16.mxu1 %v1986_v25  ;;  %v91_v23 = vld [vmem:[%s2795_s0 + $0x200] sm:$0xff]  ;;  %v86_v25 = vld [vmem:[%s2795_s0 + $0x1d8] sm:$0xff]  ;;  %v2004_v33 = vld [vmem:[%s2794_s1 + $0x110] sm:$0xff]  }
  0x1b   :  { %v83_v34 = vld [vmem:[%s2795_s0 + $0x1c0] sm:$0xff]  ;;  %v90_v35 = vld [vmem:[%s2795_s0 + $0x1f8] sm:$0xff]  ;;  %v85_v36 = vld [vmem:[%s2795_s0 + $0x1d0] sm:$0xff] }
  0x1c   :  { %1643 = vmatpush3.bf16.msra.mxu0 %v1987_v26  ;;  %v93_v26 = vld [vmem:[%s2795_s0 + $0x210] sm:$0xff]  ;;  %v92_v37 = vld [vmem:[%s2795_s0 + $0x208] sm:$0xff]  ;;  %v98_v38 = vld [vmem:[%s2795_s0 + $0x238] sm:$0xff] }
  0x1d   :  { %1707 = vmatpush3.bf16.msra.mxu1 %v1988_v27  ;;  %1644 = vmatprep.subr.bf16.mxu0 %v1989_v28  ;;  %v2002_v27 = vld [vmem:[%s2794_s1 + $0x118] sm:$0xff]   ;;  %v160_v28 = vpack.c.bf16 %v76_v19, %v69_v18  ;;  %v105_v39 = vld [vmem:[%s2795_s0 + $0x270] sm:$0xff]  ;;  %v107_v41 = vld [vmem:[%s2795_s0 + $0x280] sm:$0xff] }
  0x1e   :  { %1708 = vmatprep.subr.bf16.mxu1 %v1990_v29  ;;  %v162_v29 = vpack.c.bf16 %v78_v21, %v71_v20  ;;  %v2005_v42 = vld [vmem:[%s2794_s1 + $0x148] sm:$0xff]   ;;  %v175_v46 = vpack.c.bf16 %v105_v39, %v98_v38  ;;  %v97_v48 = vld [vmem:[%s2795_s0 + $0x230] sm:$0xff]  ;;  %v2007_v49 = vld [vmem:[%s2794_s1 + $0x140] sm:$0xff]  }
  0x1f   :  { %v2008_v52 = vld [vmem:[%s2794_s1 + $0x100] sm:$0xff]   ;;  %v106_v53 = vld [vmem:[%s2795_s0 + $0x278] sm:$0xff]  ;;  %v112_v54 = vld [vmem:[%s2795_s0 + $0x2a8] sm:$0xff] }
  0x20   :  { %1645 = vmatpush3.bf16.msra.mxu0 %v1991_v30  ;;  %v168_v30 = vpack.c.bf16 %v91_v23, %v84_v22  ;;  %v119_v55 = vld [vmem:[%s2795_s0 + $0x2e0] sm:$0xff]  ;;  %v118_v0 = vld [vmem:[%s2795_s0 + $0x2d8] sm:$0xff]  ;;  %v120_v2 = vld [vmem:[%s2795_s0 + $0x2e8] sm:$0xff] }
  0x21   :  { %1709 = vmatpush3.bf16.msra.mxu1 %v1992_v31  ;;  %1758 = vmatprep.subr.bf16.mxu0 %v1993_v44  ;;  %v170_v31 = vpack.c.bf16 %v93_v26, %v86_v25  ;;  %v182_v60 = vpack.c.bf16 %v119_v55, %v112_v54  ;;  %v111_v63 = vld [vmem:[%s2795_s0 + $0x2a0] sm:$0xff]  ;;  %v126_v3 = vld [vmem:[%s2795_s0 + $0x318] sm:$0xff]  ;;  %v133_v4 = vld [vmem:[%s2795_s0 + $0x350] sm:$0xff] }
  0x22   :  { %1945 = vmatprep.subr.bf16.mxu1 %v1993_v44  ;;  %v2006_v44 = vld [vmem:[%s2794_s1 + $0x108] sm:$0xff]   ;;  %v181_v7 = vpack.c.bf16 %v118_v0, %v111_v63  ;;  %v189_v9 = vpack.c.bf16 %v133_v4, %v126_v3  ;;  %v125_v11 = vld [vmem:[%s2795_s0 + $0x310] sm:$0xff]  ;;  %v123_v18 = vld [vmem:[%s2795_s0 + $0x300] sm:$0xff] }
  0x23   :  { %652 = vmatmul.mubr.bf16.vlgmr.msra.gmra.mxu0 %v139_v40  ;;  %v100_v40 = vld [vmem:[%s2795_s0 + $0x248] sm:$0xff]  ;;  %v31_v23 = vld [vmem:[%s2795_s0 + $0x20] sm:$0xff]  ;;  %v122_v26 = vld [vmem:[%s2795_s0 + $0x2f8] sm:$0xff] }
  0x24   :  { %749 = vmatmul.mubr.bf16.vlgmr.msra.gmra.mxu1 %v141_v43  ;;  %1759 = vmatpush3.bf16.msra.mxu0 %v1994_v45  ;;  %v167_v43 = vpack.c.bf16 %v90_v35, %v83_v34  ;;  %v177_v47 = vpack.c.bf16 %v107_v41, %v100_v40  ;;  %v115_v25 = vld [vmem:[%s2795_s0 + $0x2c0] sm:$0xff]  ;;  %v45_v35 = vld [vmem:[%s2795_s0 + $0x90] sm:$0xff]  ;;  %v136_v38 = vld [vmem:[%s2795_s0 + $0x368] sm:$0xff] }
  0x25   :  { %1953 = vmatpush3.bf16.msra.mxu1 %v1994_v45  ;;  %659 = vmatprep.mubr.bf16.mxu0 %v147_v50  ;;  %v169_v45 = vpack.c.bf16 %v92_v37, %v85_v36  ;;  %v104_v50 = vld [vmem:[%s2795_s0 + $0x268] sm:$0xff]  ;;  %v129_v37 = vld [vmem:[%s2795_s0 + $0x330] sm:$0xff]  ;;  %v67_v40 = vld [vmem:[%s2795_s0 + $0x140] sm:$0xff] }
  0x26   :  { %756 = vmatprep.mubr.bf16.mxu1 %v149_v51  ;;  %1760 = vmatprep.subr.bf16.mxu0 %v1995_v57  ;;  %v99_v51 = vld [vmem:[%s2795_s0 + $0x240] sm:$0xff]  ;;  %v52_v36 = vld [vmem:[%s2795_s0 + $0xc8] sm:$0xff]  ;;  %v33_v41 = vld [vmem:[%s2795_s0 + $0x30] sm:$0xff] }
  0x27   :  { %1946 = vmatprep.subr.bf16.mxu1 %v1995_v57  ;;  %v121_v57 = vld [vmem:[%s2795_s0 + $0x2f0] sm:$0xff]  ;;  %v60_v39 = vld [vmem:[%s2795_s0 + $0x108] sm:$0xff]  ;;  %v95_v0 = vld [vmem:[%s2795_s0 + $0x220] sm:$0xff] }
  0x28   :  { %1761 = vmatpush3.bf16.msra.mxu0 %v1996_v59  ;;  %v68_v54 = vld [vmem:[%s2795_s0 + $0x148] sm:$0xff] }
  0x29   :  { %1954 = vmatpush3.bf16.msra.mxu1 %v1996_v59  ;;  %1762 = vmatprep.subr.bf16.mxu0 %v1997_v5  ;;  %v176_v59 = vpack.c.bf16 %v106_v53, %v99_v51  ;;  %v74_v51 = vld [vmem:[%s2795_s0 + $0x178] sm:$0xff]  ;;  %v61_v53 = vld [vmem:[%s2795_s0 + $0x110] sm:$0xff]  ;;  %v88_v63 = vld [vmem:[%s2795_s0 + $0x1e8] sm:$0xff] }
  0x2a   :  { %1947 = vmatprep.subr.bf16.mxu1 %v1997_v5  ;;  %v128_v5 = vld [vmem:[%s2795_s0 + $0x328] sm:$0xff] }
  0x2b   :  { %660 = vmatmul.mubr.bf16.gmra.mxu0 %v146_v56  ;;  %v114_v56 = vld [vmem:[%s2795_s0 + $0x2b8] sm:$0xff] }
  0x2c   :  { %757 = vmatmul.mubr.bf16.gmra.mxu1 %v148_v58  ;;  %667 = vmatprep.mubr.bf16.mxu0 %v154_v62  ;;  %v174_v58 = vpack.c.bf16 %v104_v50, %v97_v48  ;;  %v184_v61 = vpack.c.bf16 %v121_v57, %v114_v56  ;;  %v2009_v62 = vld [vmem:[%s2794_s1 + $0x180] sm:$0xff]   ;;  %v66_v48 = vld [vmem:[%s2795_s0 + $0x138] sm:$0xff] }
  0x2d   :  { %764 = vmatprep.mubr.bf16.mxu1 %v156_v1  ;;  %1763 = vmatpush3.bf16.msra.mxu0 %v1998_v6  ;;  %v113_v1 = vld [vmem:[%s2795_s0 + $0x2b0] sm:$0xff]  ;;  %v54_v50 = vld [vmem:[%s2795_s0 + $0xd8] sm:$0xff] }
  0x2e   :  { %1955 = vmatpush3.bf16.msra.mxu1 %v1998_v6  ;;  %1764 = vmatprep.subr.bf16.mxu0 %v1999_v15  ;;  %v135_v6 = vld [vmem:[%s2795_s0 + $0x360] sm:$0xff]  ;;  %v183_v8 = vpack.c.bf16 %v120_v2, %v113_v1  ;;  %v89_v1 = vld [vmem:[%s2795_s0 + $0x1f0] sm:$0xff]  ;;  %v96_v2 = vld [vmem:[%s2795_s0 + $0x228] sm:$0xff] }
  0x2f   :  { %1948 = vmatprep.subr.bf16.mxu1 %v1999_v15  ;;  %v191_v10 = vpack.c.bf16 %v135_v6, %v128_v5  ;;  %v32_v15 = vld [vmem:[%s2795_s0 + $0x28] sm:$0xff]  ;;  %v172_v5 = vpack.c.bf16 %v95_v0, %v88_v63  ;;  %v173_v6 = vpack.c.bf16 %v96_v2, %v89_v1  ;;  %v2022_v0 = vld [vmem:[%s2798_s5 + $0x18] sm:$0xff]  }
  0x31   :  { %1765 = vmatpush3.bf16.msra.mxu0 %v2000_v17 }
  0x32   :  { %1956 = vmatpush3.bf16.msra.mxu1 %v2000_v17  ;;  %1766 = vmatprep.subr.bf16.mxu0 %v2001_v24  ;;  %v116_v17 = vld [vmem:[%s2795_s0 + $0x2c8] sm:$0xff] }
  0x33   :  { %668 = vmatmul.mubr.bf16.gmra.mxu0 %v153_v12  ;;  %1949 = vmatprep.subr.bf16.mxu1 %v2001_v24  ;;  %v132_v12 = vld [vmem:[%s2795_s0 + $0x348] sm:$0xff]  ;;  %v186_v22 = vpack.c.bf16 %v123_v18, %v116_v17  ;;  %v38_v24 = vld [vmem:[%s2795_s0 + $0x58] sm:$0xff] }
  0x34   :  { %765 = vmatmul.mubr.bf16.gmra.mxu1 %v155_v13  ;;  %675 = vmatprep.mubr.bf16.mxu0 %v161_v14  ;;  %v127_v13 = vld [vmem:[%s2795_s0 + $0x320] sm:$0xff]  ;;  %v134_v14 = vld [vmem:[%s2795_s0 + $0x358] sm:$0xff]  ;;  %v188_v19 = vpack.c.bf16 %v132_v12, %v125_v11  ;;  %v109_v12 = vld [vmem:[%s2795_s0 + $0x290] sm:$0xff] }
  0x35   :  { %772 = vmatprep.mubr.bf16.mxu1 %v163_v16  ;;  %1767 = vmatpush3.bf16.msra.mxu0 %v2002_v27  ;;  %v39_v16 = vld [vmem:[%s2795_s0 + $0x60] sm:$0xff]  ;;  %v190_v20 = vpack.c.bf16 %v134_v14, %v127_v13  ;;  %v102_v11 = vld [vmem:[%s2795_s0 + $0x258] sm:$0xff]  ;;  %v117_v13 = vld [vmem:[%s2795_s0 + $0x2d0] sm:$0xff] }
  0x36   :  { %1957 = vmatpush3.bf16.msra.mxu1 %v2002_v27  ;;  %1768 = vmatprep.subr.bf16.mxu0 %v2003_v32  ;;  %v144_v21 = vpack.c.bf16 %v39_v16, %v32_v15  ;;  %v46_v27 = vld [vmem:[%s2795_s0 + $0x98] sm:$0xff]  ;;  %v124_v14 = vld [vmem:[%s2795_s0 + $0x308] sm:$0xff]  ;;  %v179_v17 = vpack.c.bf16 %v109_v12, %v102_v11 }
  0x37   :  { %1950 = vmatprep.subr.bf16.mxu1 %v2003_v32  ;;  %v185_v32 = vpack.c.bf16 %v122_v26, %v115_v25  ;;  %v187_v18 = vpack.c.bf16 %v124_v14, %v117_v13  ;;  %v2010_v25 = vld [vmem:[%s2796_s3 + $0x38] sm:$0xff]   ;;  %v2011_v26 = vld [vmem:[%s2796_s3 + $0x30] sm:$0xff]  }
  0x39   :  { %1769 = vmatpush3.bf16.msra.mxu0 %v2004_v33 }
  0x3a   :  { %1958 = vmatpush3.bf16.msra.mxu1 %v2004_v33  ;;  %1770 = vmatprep.subr.bf16.mxu0 %v2005_v42 }
  0x3b   :  { %676 = vmatmul.mubr.bf16.gmra.mxu0 %v160_v28  ;;  %1951 = vmatprep.subr.bf16.mxu1 %v2005_v42  ;;  %v53_v28 = vld [vmem:[%s2795_s0 + $0xd0] sm:$0xff]  ;;  %v40_v42 = vld [vmem:[%s2795_s0 + $0x68] sm:$0xff] }
  0x3c   :  { %773 = vmatmul.mubr.bf16.gmra.mxu1 %v162_v29  ;;  %683 = vmatprep.mubr.bf16.mxu0 %v168_v30  ;;  %v130_v29 = vld [vmem:[%s2795_s0 + $0x338] sm:$0xff]  ;;  %v137_v30 = vld [vmem:[%s2795_s0 + $0x370] sm:$0xff]  ;;  %v151_v33 = vpack.c.bf16 %v53_v28, %v46_v27  ;;  %v2012_v27 = vld [vmem:[%s2796_s3 + $0x28] sm:$0xff]  }
  0x3d   :  { %780 = vmatprep.mubr.bf16.mxu1 %v170_v31  ;;  %1771 = vmatpush3.bf16.msra.mxu0 %v2006_v44  ;;  %v143_v31 = vpack.c.bf16 %v38_v24, %v31_v23  ;;  %v193_v34 = vpack.c.bf16 %v137_v30, %v130_v29  ;;  %v2013_v28 = vld [vmem:[%s2796_s3 + $0x20] sm:$0xff]   ;;  %v2014_v29 = vld [vmem:[%s2796_s3 + $0x18] sm:$0xff]   ;;  %v2015_v30 = vld [vmem:[%s2796_s3 + $0x10] sm:$0xff]  }
  0x3e   :  { %1959 = vmatpush3.bf16.msra.mxu1 %v2006_v44  ;;  %1772 = vmatprep.subr.bf16.mxu0 %v2007_v49  ;;  %v192_v44 = vpack.c.bf16 %v136_v38, %v129_v37  ;;  %v2018_v37 = vld [vmem:[%s2798_s5 + $0x38] sm:$0xff]  }
  0x3f   :  { %1952 = vmatprep.subr.bf16.mxu1 %v2007_v49  ;;  %v47_v49 = vld [vmem:[%s2795_s0 + $0xa0] sm:$0xff] }
  0x40   :  { %v152_v56 = vpack.c.bf16 %v54_v50, %v47_v49 }
  0x41   :  { %1773 = vmatpush3.bf16.msra.mxu0 %v2008_v52 }
  0x42   :  { %1960 = vmatpush3.bf16.msra.mxu1 %v2008_v52  ;;  %v81_v52 = vld [vmem:[%s2795_s0 + $0x1b0] sm:$0xff]  ;;  %1913 = vmatprep.subr.bf16.mxu0 %v2018_v37 }
  0x43   :  { %684 = vmatmul.mubr.bf16.gmra.mxu0 %v167_v43  ;;  %1863 = vmatprep.subr.bf16.mxu1 %v2009_v62  ;;  %v150_v43 = vpack.c.bf16 %v52_v36, %v45_v35  ;;  %v165_v57 = vpack.c.bf16 %v81_v52, %v74_v51  ;;  %v2584_v35 = vld [vmem:[%s2797_s2] ss:$0 sm:$0xff] }
  0x44   :  { %781 = vmatmul.mubr.bf16.gmra.mxu1 %v169_v45  ;;  %691 = vmatprep.mubr.bf16.mxu0 %v175_v46  ;;  %v158_v45 = vpack.c.bf16 %v67_v40, %v60_v39  ;;  %v145_v46 = vpack.c.bf16 %v40_v42, %v33_v41  ;;  %v2019_v40 = vld [vmem:[%s2798_s5 + $0x30] sm:$0xff]  }
  0x45   :  { %788 = vmatprep.mubr.bf16.mxu1 %v177_v47  ;;  %v59_v47 = vld [vmem:[%s2795_s0 + $0x100] sm:$0xff] }
  0x46   :  { %v157_v55 = vpack.c.bf16 %v66_v48, %v59_v47 }
  0x4b   :  { %692 = vmatmul.mubr.bf16.gmra.mxu0 %v174_v58  ;;  %v159_v58 = vpack.c.bf16 %v68_v54, %v61_v53 }
  0x4c   :  { %789 = vmatmul.mubr.bf16.gmra.mxu1 %v176_v59  ;;  %699 = vmatprep.mubr.bf16.mxu0 %v182_v60  ;;  %v73_v59 = vld [vmem:[%s2795_s0 + $0x170] sm:$0xff]  ;;  %v80_v60 = vld [vmem:[%s2795_s0 + $0x1a8] sm:$0xff] }
  0x4d   :  { %796 = vmatprep.mubr.bf16.mxu1 %v184_v61  ;;  %v75_v61 = vld [vmem:[%s2795_s0 + $0x180] sm:$0xff]  ;;  %v164_v3 = vpack.c.bf16 %v80_v60, %v73_v59 }
  0x53   :  { %700 = vmatmul.mubr.bf16.gmra.mxu0 %v181_v7  ;;  %v87_v7 = vld [vmem:[%s2795_s0 + $0x1e0] sm:$0xff] }
  0x54   :  { %797 = vmatmul.mubr.bf16.gmra.mxu1 %v183_v8  ;;  %707 = vmatprep.mubr.bf16.mxu0 %v189_v9  ;;  %v94_v8 = vld [vmem:[%s2795_s0 + $0x218] sm:$0xff]  ;;  %v103_v9 = vld [vmem:[%s2795_s0 + $0x260] sm:$0xff] }
  0x55   :  { %804 = vmatprep.mubr.bf16.mxu1 %v191_v10  ;;  %v110_v10 = vld [vmem:[%s2795_s0 + $0x298] sm:$0xff]  ;;  %v171_v15 = vpack.c.bf16 %v94_v8, %v87_v7 }
  0x56   :  { %v180_v16 = vpack.c.bf16 %v110_v10, %v103_v9 }
  0x5b   :  { %708 = vmatmul.mubr.bf16.gmra.mxu0 %v188_v19  ;;  %v101_v19 = vld [vmem:[%s2795_s0 + $0x250] sm:$0xff] }
  0x5c   :  { %805 = vmatmul.mubr.bf16.gmra.mxu1 %v190_v20  ;;  %845 = vmatprep.mubr.bf16.mxu0 %v144_v21  ;;  %v108_v20 = vld [vmem:[%s2795_s0 + $0x288] sm:$0xff]  ;;  %v131_v21 = vld [vmem:[%s2795_s0 + $0x340] sm:$0xff] }
  0x5d   :  { %893 = vmatprep.mubr.bf16.mxu1 %v186_v22  ;;  %v138_v22 = vld [vmem:[%s2795_s0 + $0x378] sm:$0xff]  ;;  %v178_v23 = vpack.c.bf16 %v108_v20, %v101_v19 }
  0x5e   :  { %v194_v24 = vpack.c.bf16 %v138_v22, %v131_v21 }
  0x63   :  { %846 = vmatmul.mubr.bf16.vlgmr.msra.gmra.mxu0 %v143_v31  ;;  %v2016_v31 = vld [vmem:[%s2796_s3 + $0x8] sm:$0xff]  }
  0x64   :  { %894 = vmatmul.mubr.bf16.vlgmr.msra.gmra.mxu1 %v185_v32  ;;  %853 = vmatprep.mubr.bf16.mxu0 %v151_v33  ;;  %v2017_v32 = vld [vmem:[%s2796_s3] sm:$0xff]  }
  0x65   :  { %901 = vmatprep.mubr.bf16.mxu1 %v193_v34  ;;  %1864 = vmatpush3.bf16.msra.mxu1 %v2009_v62  ;;  %v82_v62 = vld [vmem:[%s2795_s0 + $0x1b8] sm:$0xff] }
  0x66   :  { %v166_v4 = vpack.c.bf16 %v82_v62, %v75_v61  ;;  %1881 = vmatprep.subr.bf16.mxu1 %v2010_v25  ;;  %1914 = vmatpush3.bf16.msra.mxu0 %v2018_v37 }
  0x67   :  { %1915 = vmatprep.subr.bf16.mxu0 %v2019_v40 }
  0x6a   :  { %1916 = vmatpush3.bf16.msra.mxu0 %v2019_v40 }
  0x6b   :  { %854 = vmatmul.mubr.bf16.gmra.mxu0 %v150_v43 }
  0x6c   :  { %902 = vmatmul.mubr.bf16.gmra.mxu1 %v192_v44  ;;  %861 = vmatprep.mubr.bf16.mxu0 %v158_v45 }
  0x6d   :  { %1865 = vmatprep.mubr.msk.bf16.mxu1 %vm594_vm0, %v145_v46  ;;  %v2020_v46 = vld [vmem:[%s2798_s5 + $0x28] sm:$0xff]  }
  0x6e   :  { %1917 = vmatprep.subr.bf16.mxu0 %v2020_v46 }
  0x6f   :  { %1918 = vmatpush3.bf16.msra.mxu0 %v2020_v46 }
  0x73   :  { %862 = vmatmul.mubr.bf16.gmra.mxu0 %v157_v55  ;;  %v2021_v55 = vld [vmem:[%s2798_s5 + $0x20] sm:$0xff]  }
  0x74   :  { %1866 = vmatmul.mubr.msk.bf16.vlgmr.msra.gmra.mxu1 %vm594_vm0, %v152_v56  ;;  %869 = vmatprep.mubr.bf16.mxu0 %v165_v57 }
  0x75   :  { %1869 = vmatprep.mubr.msk.bf16.mxu1 %vm594_vm0, %v159_v58  ;;  %1882 = vmatpush3.bf16.msra.mxu1 %v2010_v25 }
  0x76   :  { %1883 = vmatprep.subr.bf16.mxu1 %v2011_v26  ;;  %1919 = vmatprep.subr.bf16.mxu0 %v2021_v55 }
  0x77   :  { %1920 = vmatpush3.bf16.msra.mxu0 %v2021_v55 }
  0x78   :  { %1921 = vmatprep.subr.bf16.mxu0 %v2022_v0 }
  0x79   :  { %1884 = vmatpush3.bf16.msra.mxu1 %v2011_v26 }
  0x7a   :  { %1885 = vmatprep.subr.bf16.mxu1 %v2012_v27 }
  0x7b   :  { %870 = vmatmul.mubr.bf16.gmra.mxu0 %v164_v3 }
  0x7c   :  { %1870 = vmatmul.mubr.msk.bf16.gmra.mxu1 %vm594_vm0, %v166_v4  ;;  %877 = vmatprep.mubr.bf16.mxu0 %v172_v5 }
  0x7d   :  { %1873 = vmatprep.mubr.msk.bf16.mxu1 %vm594_vm0, %v173_v6  ;;  %1886 = vmatpush3.bf16.msra.mxu1 %v2012_v27 }
  0x7e   :  { %1887 = vmatprep.subr.bf16.mxu1 %v2013_v28  ;;  %1922 = vmatpush3.bf16.msra.mxu0 %v2022_v0 }
  0x81   :  { %1888 = vmatpush3.bf16.msra.mxu1 %v2013_v28 }
  0x82   :  { %1889 = vmatprep.subr.bf16.mxu1 %v2014_v29 }
  0x83   :  { %878 = vmatmul.mubr.bf16.gmra.mxu0 %v171_v15 }
  0x84   :  { %1874 = vmatmul.mubr.msk.bf16.gmra.mxu1 %vm594_vm0, %v180_v16  ;;  %885 = vmatprep.mubr.bf16.mxu0 %v179_v17 }
  0x85   :  { %1877 = vmatprep.mubr.msk.bf16.mxu1 %vm594_vm0, %v187_v18  ;;  %1890 = vmatpush3.bf16.msra.mxu1 %v2014_v29 }
  0x86   :  { %1891 = vmatprep.subr.bf16.mxu1 %v2015_v30 }
  0x89   :  { %1892 = vmatpush3.bf16.msra.mxu1 %v2015_v30 }
  0x8a   :  { %1893 = vmatprep.subr.bf16.mxu1 %v2016_v31 }
  0x8b   :  { %886 = vmatmul.mubr.bf16.gmra.mxu0 %v178_v23 }
  0x8c   :  { %1878 = vmatmul.mubr.msk.bf16.gmra.mxu1 %vm594_vm0, %v194_v24 }
  0x8d   :  { %1894 = vmatpush3.bf16.msra.mxu1 %v2016_v31 }
  0x8e   :  { %1895 = vmatprep.subr.bf16.mxu1 %v2017_v32 }
  0x91   :  { %1896 = vmatpush3.bf16.msra.mxu1 %v2017_v32 }
  0xe3   :  { %v1646_v33 = vpop.f32.mrf.mxu0 }
  0xe4   :  { %v1710_v34 = vpop.f32.mrf.mxu1 }
  0xe5   :  { %v1647_v36 = vpop.f32.mrf.mxu0 }
  0xe6   :  { %v1648_v38 = vadd.f32 %v1647_v36, %v1646_v33  ;;  %v1711_v39 = vpop.f32.mrf.mxu1 }
  0xe7   :  { %v1712_v41 = vadd.f32 %v1711_v39, %v1710_v34  ;;  %v1649_v42 = vpop.f32.mrf.mxu0 }
  0xe8   :  { %v654_v43 = vadd.f32 %v1648_v38, %v2584_v35  ;;  %v1713_v44 = vpop.f32.mrf.mxu1 }
  0xe9   :  { %v1650_v45 = vpop.f32.mrf.mxu0 }
  0xea   :  { %v2596_v47 = vadd.f32 %v1712_v41, %v654_v43  ;;  %v1651_v48 = vadd.f32 %v1650_v45, %v1649_v42  ;;  %v1714_v49 = vpop.f32.mrf.mxu1 }
  0xeb   :  { %v1715_v50 = vadd.f32 %v1714_v49, %v1713_v44  ;;  %v1652_v51 = vpop.f32.mrf.mxu0 }
  0xec   :  { %v657_v52 = vadd.f32 %v1651_v48, %v2584_v35  ;;  %v1716_v53 = vpop.f32.mrf.mxu1 }
  0xed   :  { %v1653_v54 = vpop.f32.mrf.mxu0 }
  0xee   :  { %v2602_v56 = vadd.f32 %v1715_v50, %v657_v52  ;;  %v1654_v57 = vadd.f32 %v1653_v54, %v1652_v51  ;;  %v1717_v58 = vpop.f32.mrf.mxu1 }
  0xef   :  { %v1718_v59 = vadd.f32 %v1717_v58, %v1716_v53  ;;  %v1655_v60 = vpop.f32.mrf.mxu0 }
  0xf0   :  { %v662_v61 = vadd.f32 %v1654_v57, %v2584_v35  ;;  %v1719_v62 = vpop.f32.mrf.mxu1 }
  0xf1   :  { %v1656_v63 = vpop.f32.mrf.mxu0 }
  0xf2   :  { %v2608_v1 = vadd.f32 %v1718_v59, %v662_v61  ;;  %v1657_v2 = vadd.f32 %v1656_v63, %v1655_v60  ;;  %v1720_v3 = vpop.f32.mrf.mxu1 }
  0xf3   :  { %v1721_v4 = vadd.f32 %v1720_v3, %v1719_v62  ;;  %v1658_v5 = vpop.f32.mrf.mxu0 }
  0xf4   :  { %v665_v6 = vadd.f32 %v1657_v2, %v2584_v35  ;;  %v1722_v7 = vpop.f32.mrf.mxu1 }
  0xf5   :  { %v1659_v8 = vpop.f32.mrf.mxu0 }
  0xf6   :  { %v2611_v9 = vadd.f32 %v1721_v4, %v665_v6  ;;  %v1660_v10 = vadd.f32 %v1659_v8, %v1658_v5  ;;  %v1723_v11 = vpop.f32.mrf.mxu1 }
  0xf7   :  { %v1724_v12 = vadd.f32 %v1723_v11, %v1722_v7  ;;  %v1661_v13 = vpop.f32.mrf.mxu0 }
  0xf8   :  { %v670_v14 = vadd.f32 %v1660_v10, %v2584_v35  ;;  %v1725_v15 = vpop.f32.mrf.mxu1 }
  0xf9   :  { %v1662_v16 = vpop.f32.mrf.mxu0 }
  0xfa   :  { %v2614_v17 = vadd.f32 %v1724_v12, %v670_v14  ;;  %v1663_v18 = vadd.f32 %v1662_v16, %v1661_v13  ;;  %v1726_v19 = vpop.f32.mrf.mxu1 }
  0xfb   :  { %v1727_v20 = vadd.f32 %v1726_v19, %v1725_v15  ;;  %v1664_v21 = vpop.f32.mrf.mxu0 }
  0xfc   :  { %v673_v22 = vadd.f32 %v1663_v18, %v2584_v35  ;;  %v1728_v23 = vpop.f32.mrf.mxu1 }
  0xfd   :  { %v1665_v24 = vpop.f32.mrf.mxu0 }
  0xfe   :  { %v2617_v25 = vadd.f32 %v1727_v20, %v673_v22  ;;  %v1666_v26 = vadd.f32 %v1665_v24, %v1664_v21  ;;  %v1729_v27 = vpop.f32.mrf.mxu1 }
  0xff   :  { %v1730_v28 = vadd.f32 %v1729_v27, %v1728_v23  ;;  %v2619_v29 = vpop.f32.mrf.mxu0 }
 0x100   :  { %v678_v30 = vadd.f32 %v1666_v26, %v2584_v35  ;;  %v2622_v31 = vpop.f32.mrf.mxu1 }
 0x101   :  { %v2624_v32 = vpop.f32.mrf.mxu0 }
 0x102   :  { %v2626_v33 = vadd.f32 %v1730_v28, %v678_v30  ;;  %v2628_v34 = vpop.f32.mrf.mxu1 }
 0x103   :  { %v1670_v36 = vpop.f32.mrf.mxu0 }
 0x104   :  { %v1734_v37 = vpop.f32.mrf.mxu1 }
 0x105   :  { %v1671_v38 = vpop.f32.mrf.mxu0 }
 0x106   :  { %v1672_v39 = vadd.f32 %v1671_v38, %v1670_v36  ;;  %v1735_v40 = vpop.f32.mrf.mxu1 }
 0x107   :  { %v1736_v41 = vadd.f32 %v1735_v40, %v1734_v37  ;;  %v2630_v42 = vpop.f32.mrf.mxu0 }
 0x108   :  { %v686_v43 = vadd.f32 %v1672_v39, %v2584_v35  ;;  %v2633_v44 = vpop.f32.mrf.mxu1 }
 0x109   :  { %v2635_v45 = vpop.f32.mrf.mxu0 }
 0x10a   :  { %v2637_v46 = vadd.f32 %v1736_v41, %v686_v43  ;;  %v2639_v48 = vpop.f32.mrf.mxu1 }
 0x10b   :  { %v1676_v49 = vpop.f32.mrf.mxu0 }
 0x10c   :  { %v1740_v50 = vpop.f32.mrf.mxu1 }
 0x10d   :  { %v1677_v51 = vpop.f32.mrf.mxu0 }
 0x10e   :  { %v1678_v52 = vadd.f32 %v1677_v51, %v1676_v49  ;;  %v1741_v53 = vpop.f32.mrf.mxu1 }
 0x10f   :  { %v1742_v54 = vadd.f32 %v1741_v53, %v1740_v50  ;;  %v2641_v55 = vpop.f32.mrf.mxu0 }
 0x110   :  { %v694_v57 = vadd.f32 %v1678_v52, %v2584_v35  ;;  %v2644_v58 = vpop.f32.mrf.mxu1 }
 0x111   :  { %v2646_v59 = vpop.f32.mrf.mxu0 }
 0x112   :  { %v2648_v60 = vadd.f32 %v1742_v54, %v694_v57  ;;  %v2650_v61 = vpop.f32.mrf.mxu1 }
 0x113   :  { %v2652_v62 = vpop.f32.mrf.mxu0 }
 0x114   :  { %v2654_v63 = vpop.f32.mrf.mxu1 }
 0x115   :  { %v2656_v0 = vpop.f32.mrf.mxu0 }
 0x116   :  { %v2658_v2 = vpop.f32.mrf.mxu1 }
 0x117   :  { %v2660_v3 = vpop.f32.mrf.mxu0 }
 0x118   :  { %v2662_v4 = vpop.f32.mrf.mxu1 }
 0x119   :  { %v2664_v5 = vpop.f32.mrf.mxu0 }
 0x11a   :  { %v2666_v6 = vpop.f32.mrf.mxu1 }
 0x11b   :  { %v2668_v7 = vpop.f32.mrf.mxu0 }
 0x11c   :  { %v2670_v8 = vpop.f32.mrf.mxu1 }
 0x11d   :  { %2802 = vst [vmem:[#allocation2_spill] sm:$0xff] %v2670_v8  ;;  %v2672_v10 = vpop.f32.mrf.mxu0 }
 0x11e   :  { %v2674_v11 = vpop.f32.mrf.mxu1 }
 0x11f   :  { %2803 = vst [vmem:[#allocation3_spill] sm:$0xff] %v2674_v11  ;;  %v2676_v12 = vpop.f32.mrf.mxu0 }
 0x120   :  { %v2678_v13 = vpop.f32.mrf.mxu1 }
 0x121   :  { %v2680_v14 = vpop.f32.mrf.mxu0 }
 0x122   :  { %v2682_v15 = vpop.f32.mrf.mxu1 }
 0x123   :  { %v1774_v16 = vpop.f32.mrf.mxu0 }
 0x124   :  { %v2684_v18 = vpop.f32.mrf.mxu1 }
 0x125   :  { %v1775_v19 = vpop.f32.mrf.mxu0 }
 0x126   :  { %v2686_v20 = vpop.f32.mrf.mxu1  ;;  %v1776_v41 = vadd.f32 %v1775_v19, %v1774_v16  ;;  %v1669_v19 = vadd.f32 %v2624_v32, %v2619_v29 }
 0x127   :  { %v1777_v21 = vpop.f32.mrf.mxu0 }
 0x128   :  { %v2688_v22 = vpop.f32.mrf.mxu1 }
 0x129   :  { %v1778_v23 = vpop.f32.mrf.mxu0 }
 0x12a   :  { %v2690_v24 = vpop.f32.mrf.mxu1  ;;  %v1779_v51 = vadd.f32 %v1778_v23, %v1777_v21 }
 0x12b   :  { %v1780_v26 = vpop.f32.mrf.mxu0 }
 0x12c   :  { %v2692_v27 = vpop.f32.mrf.mxu1  ;;  %v851_v16 = vadd.f32 %v1779_v51, %v2602_v56  ;;  %v1733_v56 = vadd.f32 %v2628_v34, %v2622_v31 }
 0x12d   :  { %2804 = vst [vmem:[#allocation4_spill] sm:$0xff] %v2692_v27  ;;  %v1781_v28 = vpop.f32.mrf.mxu0  ;;  %v848_v27 = vadd.f32 %v1776_v41, %v2596_v47 }
 0x12e   :  { %v2694_v30 = vpop.f32.mrf.mxu1  ;;  %v1782_v38 = vadd.f32 %v1781_v28, %v1780_v26 }
 0x12f   :  { %2805 = vst [vmem:[#allocation5_spill] sm:$0xff] %v2694_v30  ;;  %v1783_v36 = vpop.f32.mrf.mxu0 }
 0x130   :  { %v2696_v37 = vpop.f32.mrf.mxu1  ;;  %v856_v52 = vadd.f32 %v1782_v38, %v2608_v1 }
 0x131   :  { %2806 = vst [vmem:[#allocation6_spill] sm:$0xff] %v2696_v37  ;;  %v1784_v39 = vpop.f32.mrf.mxu0 }
 0x132   :  { %v2698_v40 = vpop.f32.mrf.mxu1  ;;  %v1785_v43 = vadd.f32 %v1784_v39, %v1783_v36 }
 0x133   :  { %v1786_v49 = vpop.f32.mrf.mxu0 }
 0x134   :  { %v1867_v50 = vpop.f32.mrf.mxu1  ;;  %v859_v11 = vadd.f32 %v1785_v43, %v2611_v9 }
 0x135   :  { %v1787_v53 = vpop.f32.mrf.mxu0  ;;  %v953_v57 = vadd.f32 %v1867_v50, %v856_v52 }
 0x136   :  { %v944_v54 = vpop.f32.mrf.mxu1  ;;  %v1788_v1 = vadd.f32 %v1787_v53, %v1786_v49 }
 0x137   :  { %v1789_v30 = vpop.f32.mrf.mxu0  ;;  %v945_v26 = vadd.f32 %v944_v54, %v848_v27  ;;  %v1009_v23 = vmax.f32 %v953_v57, 0.0 }
 0x138   :  { %v1868_v37 = vpop.f32.mrf.mxu1  ;;  %v864_v32 = vadd.f32 %v1788_v1, %v2614_v17 }
 0x139   :  { %v956_v28 = vadd.f32 %v1868_v37, %v859_v11  ;;  %v1790_v8 = vpop.f32.mrf.mxu0  ;;  %v1007_v47 = vmax.f32 %v945_v26, 0.0  ;;  %v681_v11 = vadd.f32 %v1669_v19, %v2584_v35  ;;  %v1675_v26 = vadd.f32 %v2635_v45, %v2630_v42 }
 0x13a   :  { %v947_v21 = vpop.f32.mrf.mxu1  ;;  %v1791_v52 = vadd.f32 %v1790_v8, %v1789_v30  ;;  %v1687_v45 = vadd.f32 %v2664_v5, %v2660_v3  ;;  %v1751_v5 = vadd.f32 %v2666_v6, %v2662_v4  ;;  %v1693_v4 = vadd.f32 %v2680_v14, %v2676_v12 }
 0x13b   :  { %v1010_v36 = vmax.f32 %v956_v28, 0.0  ;;  %v948_v38 = vadd.f32 %v947_v21, %v851_v16  ;;  %v1792_v39 = vpop.f32.mrf.mxu0  ;;  %v778_v30 = vadd.f32 %v1733_v56, %v681_v11  ;;  %v1681_v11 = vadd.f32 %v2646_v59, %v2641_v55 }
 0x13c   :  { %v1871_v50 = vpop.f32.mrf.mxu1  ;;  %v867_v8 = vadd.f32 %v1791_v52, %v2617_v25  ;;  %v1739_v25 = vadd.f32 %v2639_v48, %v2633_v44  ;;  %v1684_v56 = vadd.f32 %v2656_v0, %v2652_v62  ;;  %v705_v3 = vadd.f32 %v1687_v45, %v2584_v35 }
 0x13d   :  { %v1024_v41 = vpack.c.bf16 %v1010_v36, %v1009_v23  ;;  %v1008_v9 = vmax.f32 %v948_v38, 0.0  ;;  %v1793_v43 = vpop.f32.mrf.mxu0  ;;  %v689_v36 = vadd.f32 %v1675_v26, %v2584_v35  ;;  %v697_v62 = vadd.f32 %v1681_v11, %v2584_v35 }
 0x13e   :  { %v1794_v27 = vadd.f32 %v1793_v43, %v1792_v39  ;;  %v960_v37 = vpop.f32.mrf.mxu1  ;;  %v702_v0 = vadd.f32 %v1684_v56, %v2584_v35  ;;  %v1690_v26 = vadd.f32 %v2672_v10, %v2668_v7  ;;  %v713_v14 = vadd.f32 %v1693_v4, %v2584_v35 }
 0x13f   :  { %v1023_v29 = vpack.c.bf16 %v1008_v9, %v1007_v47  ;;  %v1795_v49 = vpop.f32.mrf.mxu0  ;;  %v961_v54 = vadd.f32 %v960_v37, %v864_v32  ;;  %v786_v48 = vadd.f32 %v1739_v25, %v689_v36 }
 0x140   :  { %v872_v51 = vadd.f32 %v1794_v27, %v2626_v33  ;;  %v1872_v53 = vpop.f32.mrf.mxu1 }
 0x141   :  { %1897 = vmatprep.mubr.bf16.mxu1 %v1023_v29  ;;  %v1796_v57 = vpop.f32.mrf.mxu0  ;;  %v1011_v33 = vmax.f32 %v961_v54, 0.0 }
 0x142   :  { %v1797_v28 = vadd.f32 %v1796_v57, %v1795_v49  ;;  %v963_v31 = vpop.f32.mrf.mxu1  ;;  %1898 = vmatmul.mubr.bf16.vlgmr.msra.gmra.mxu1 %v1024_v41  ;;  %v969_v19 = vadd.f32 %v1871_v50, %v872_v51  ;;  %v1748_v51 = vadd.f32 %v2658_v2, %v2654_v63  ;;  %v802_v57 = vadd.f32 %v1751_v5, %v705_v3  ;;  %v2024_v3 = vld [vmem:[%s2798_s5 + $0x8] sm:$0xff]   ;;  %v2025_v5 = vld [vmem:[%s2798_s5] sm:$0xff]  }
 0x143   :  { %v964_v34 = vadd.f32 %v963_v31, %v867_v8  ;;  %v1798_v16 = vpop.f32.mrf.mxu0  ;;  %v1812_v8 = vadd.f32 %v2686_v20, %v2684_v18 }
 0x144   :  { %v875_v17 = vadd.f32 %v1797_v28, %v778_v30  ;;  %v2714_v21 = vpop.f32.mrf.mxu1  ;;  %v1013_v50 = vmax.f32 %v969_v19, 0.0  ;;  %v799_v31 = vadd.f32 %v1748_v51, %v702_v0 }
 0x145   :  { %v1012_v23 = vmax.f32 %v964_v34, 0.0  ;;  %v1799_v1 = vpop.f32.mrf.mxu0 }
 0x146   :  { %v972_v38 = vadd.f32 %v1872_v53, %v875_v17  ;;  %v1800_v39 = vadd.f32 %v1799_v1, %v1798_v16  ;;  %v976_v42 = vpop.f32.mrf.mxu1  ;;  %v1815_v53 = vadd.f32 %v2690_v24, %v2688_v22  ;;  %v1757_v16 = vadd.f32 %v2682_v15, %v2678_v13  ;;  %v2807_v17 = vld [vmem:[#allocation2_spill] sm:$0xff]  ;;  %v2810_v13 = vld [vmem:[#allocation4_spill] sm:$0xff]  ;;  %v2811_v15 = vld [vmem:[#allocation5_spill] sm:$0xff] }
 0x147   :  { %v1025_v47 = vpack.c.bf16 %v1012_v23, %v1011_v33  ;;  %v1801_v41 = vpop.f32.mrf.mxu0  ;;  %v2808_v33 = vld [vmem:[#allocation3_spill] sm:$0xff]  ;;  %v896_v10 = vadd.f32 %v1812_v8, %v799_v31  ;;  %v2809_v1 = vld [vmem:[#allocation6_spill] sm:$0xff]  ;;  %v1818_v45 = vadd.f32 %v2811_v15, %v2810_v13 }
 0x148   :  { %v1014_v52 = vmax.f32 %v972_v38, 0.0  ;;  %v880_v9 = vadd.f32 %v1800_v39, %v2637_v46  ;;  %v1876_v43 = vpop.f32.mrf.mxu1  ;;  %v1745_v46 = vadd.f32 %v2650_v61, %v2644_v58  ;;  %v899_v12 = vadd.f32 %v1815_v53, %v802_v57 }
 0x149   :  { %1901 = vmatprep.mubr.bf16.mxu1 %v1025_v47  ;;  %v1802_v44 = vpop.f32.mrf.mxu0  ;;  %v1754_v7 = vadd.f32 %v2808_v33, %v2807_v17  ;;  %v1821_v36 = vadd.f32 %v2698_v40, %v2809_v1 }
 0x14a   :  { %v1803_v27 = vadd.f32 %v1802_v44, %v1801_v41  ;;  %v979_v37 = vpop.f32.mrf.mxu1  ;;  %v1026_v29 = vpack.c.bf16 %v1014_v52, %v1013_v50  ;;  %v977_v49 = vadd.f32 %v976_v42, %v880_v9  ;;  %v794_v24 = vadd.f32 %v1745_v46, %v697_v62 }
 0x14b   :  { %v1804_v32 = vpop.f32.mrf.mxu0  ;;  %v810_v42 = vadd.f32 %v1757_v16, %v713_v14 }
 0x14c   :  { %v883_v55 = vadd.f32 %v1803_v27, %v786_v48  ;;  %v1879_v59 = vpop.f32.mrf.mxu1  ;;  %1902 = vmatmul.mubr.bf16.gmra.mxu1 %v1026_v29  ;;  %v1015_v28 = vmax.f32 %v977_v49, 0.0  ;;  %v1533_v49 = vld [vmem:[%s2799_s4] ss:$0 sm:$0xff] }
 0x14d   :  { %v1805_v54 = vpop.f32.mrf.mxu0  ;;  %v907_v9 = vadd.f32 %v1821_v36, %v810_v42 }
 0x14e   :  { %v980_v6 = vadd.f32 %v979_v37, %v883_v55  ;;  %v1806_v58 = vadd.f32 %v1805_v54, %v1804_v32  ;;  %v992_v61 = vpop.f32.mrf.mxu1 }
 0x14f   :  { %v1807_v30 = vpop.f32.mrf.mxu0  ;;  %v993_v39 = vadd.f32 %v992_v61, %v896_v10 }
 0x150   :  { %v1016_v63 = vmax.f32 %v980_v6, 0.0  ;;  %v888_v2 = vadd.f32 %v1806_v58, %v2648_v60  ;;  %v1880_v22 = vpop.f32.mrf.mxu1  ;;  %v710_v60 = vadd.f32 %v1690_v26, %v2584_v35 }
 0x151   :  { %v1808_v34 = vpop.f32.mrf.mxu0  ;;  %v1019_v56 = vmax.f32 %v993_v39, 0.0  ;;  %v1004_v44 = vadd.f32 %v1880_v22, %v907_v9 }
 0x152   :  { %v1027_v19 = vpack.c.bf16 %v1016_v63, %v1015_v28  ;;  %v1809_v18 = vadd.f32 %v1808_v34, %v1807_v30  ;;  %v995_v20 = vpop.f32.mrf.mxu1  ;;  %v985_v25 = vadd.f32 %v2714_v21, %v888_v2  ;;  %v807_v50 = vadd.f32 %v1754_v7, %v710_v60 }
 0x153   :  { %v996_v23 = vadd.f32 %v995_v20, %v899_v12  ;;  %v1022_v21 = vmax.f32 %v1004_v44, 0.0 }
 0x154   :  { %v891_v38 = vadd.f32 %v1809_v18, %v794_v24  ;;  %1905 = vmatprep.mubr.bf16.mxu1 %v1027_v19  ;;  %v1017_v52 = vmax.f32 %v985_v25, 0.0  ;;  %v904_v35 = vadd.f32 %v1818_v45, %v807_v50 }
 0x155   :  { %v1020_v41 = vmax.f32 %v996_v23, 0.0 }
 0x156   :  { %v988_v47 = vadd.f32 %v1876_v43, %v891_v38  ;;  %v1001_v27 = vadd.f32 %v1879_v59, %v904_v35  ;;  %v2023_v43 = vld [vmem:[%s2798_s5 + $0x10] sm:$0xff]  }
 0x157   :  { %v1029_v40 = vpack.c.bf16 %v1020_v41, %v1019_v56  ;;  %1923 = vmatprep.subr.bf16.mxu0 %v2023_v43 }
 0x158   :  { %v1018_v11 = vmax.f32 %v988_v47, 0.0  ;;  %v1021_v37 = vmax.f32 %v1001_v27, 0.0  ;;  %1924 = vmatpush3.bf16.msra.mxu0 %v2023_v43 }
 0x159   :  { %1925 = vmatprep.subr.bf16.mxu0 %v2024_v3 }
 0x15a   :  { %v1028_v48 = vpack.c.bf16 %v1018_v11, %v1017_v52  ;;  %v1030_v29 = vpack.c.bf16 %v1022_v21, %v1021_v37  ;;  %v1542_v21 = vld [vmem:[%s2800_s6] ss:$0 sm:$0xff] }
 0x15c   :  { %1906 = vmatmul.mubr.bf16.gmra.mxu1 %v1028_v48  ;;  %1926 = vmatpush3.bf16.msra.mxu0 %v2024_v3 }
 0x15d   :  { %1909 = vmatprep.mubr.bf16.mxu1 %v1029_v40  ;;  %1927 = vmatprep.subr.bf16.mxu0 %v2025_v5 }
 0x160   :  { %1928 = vmatpush3.bf16.msra.mxu0 %v2025_v5 }
 0x164   :  { %1910 = vmatmul.mubr.bf16.gmra.mxu1 %v1030_v29 }
 0x202   :  { %v1899_v32 = vpop.f32.mrf.mxu1 }
 0x203   :  { %v1145_v0 = vadd.f32 %v1899_v32, %v1533_v49 }
 0x204   :  { %v1136_v46 = vpop.f32.mrf.mxu1 }
 0x205   :  { %v1137_v59 = vadd.f32 %v1533_v49, %v1136_v46  ;;  %v1201_v58 = vmax.f32 %v1145_v0, 0.0 }
 0x206   :  { %v1900_v55 = vpop.f32.mrf.mxu1 }
 0x207   :  { %v1148_v62 = vadd.f32 %v1900_v55, %v1533_v49  ;;  %v1199_v4 = vmax.f32 %v1137_v59, 0.0 }
 0x208   :  { %v1139_v51 = vpop.f32.mrf.mxu1 }
 0x209   :  { %v1140_v53 = vadd.f32 %v1533_v49, %v1139_v51  ;;  %v1202_v54 = vmax.f32 %v1148_v62, 0.0 }
 0x20b   :  { %v1200_v6 = vmax.f32 %v1140_v53, 0.0  ;;  %v1216_v8 = vpack.c.bf16 %v1202_v54, %v1201_v58 }
 0x20c   :  { %v1903_v61 = vpop.f32.mrf.mxu1 }
 0x20d   :  { %v1215_v57 = vpack.c.bf16 %v1200_v6, %v1199_v4  ;;  %v1161_v2 = vadd.f32 %v1903_v61, %v1533_v49 }
 0x20e   :  { %v1152_v30 = vpop.f32.mrf.mxu1 }
 0x20f   :  { %1929 = vmatprep.mubr.bf16.mxu0 %v1215_v57  ;;  %v1153_v28 = vadd.f32 %v1533_v49, %v1152_v30  ;;  %v1205_v14 = vmax.f32 %v1161_v2, 0.0 }
 0x210   :  { %1930 = vmatmul.mubr.bf16.vlgmr.msra.gmra.mxu0 %v1216_v8  ;;  %v1904_v26 = vpop.f32.mrf.mxu1 }
 0x211   :  { %v1164_v63 = vadd.f32 %v1904_v26, %v1533_v49  ;;  %v1203_v34 = vmax.f32 %v1153_v28, 0.0 }
 0x212   :  { %v1155_v22 = vpop.f32.mrf.mxu1 }
 0x213   :  { %v1156_v24 = vadd.f32 %v1533_v49, %v1155_v22  ;;  %v1206_v31 = vmax.f32 %v1164_v63, 0.0 }
 0x215   :  { %v1204_v12 = vmax.f32 %v1156_v24, 0.0  ;;  %v1218_v19 = vpack.c.bf16 %v1206_v31, %v1205_v14 }
 0x217   :  { %v1217_v16 = vpack.c.bf16 %v1204_v12, %v1203_v34 }
 0x219   :  { %1933 = vmatprep.mubr.bf16.mxu0 %v1217_v16 }
 0x21a   :  { %1934 = vmatmul.mubr.bf16.gmra.mxu0 %v1218_v19 }
 0x21c   :  { %v1907_v18 = vpop.f32.mrf.mxu1 }
 0x21d   :  { %v1177_v10 = vadd.f32 %v1907_v18, %v1533_v49 }
 0x21e   :  { %v1168_v20 = vpop.f32.mrf.mxu1 }
 0x21f   :  { %v1169_v33 = vadd.f32 %v1533_v49, %v1168_v20  ;;  %v1209_v39 = vmax.f32 %v1177_v10, 0.0 }
 0x220   :  { %v1908_v17 = vpop.f32.mrf.mxu1 }
 0x221   :  { %v1180_v7 = vadd.f32 %v1908_v17, %v1533_v49  ;;  %v1207_v25 = vmax.f32 %v1169_v33, 0.0 }
 0x222   :  { %v1171_v23 = vpop.f32.mrf.mxu1 }
 0x223   :  { %v1172_v60 = vadd.f32 %v1533_v49, %v1171_v23  ;;  %v1210_v1 = vmax.f32 %v1180_v7, 0.0 }
 0x224   :  { %v1911_v36 = vpop.f32.mrf.mxu1 }
 0x225   :  { %v1208_v38 = vmax.f32 %v1172_v60, 0.0  ;;  %v1220_v15 = vpack.c.bf16 %v1210_v1, %v1209_v39  ;;  %v1193_v50 = vadd.f32 %v1911_v36, %v1533_v49 }
 0x226   :  { %v1184_v42 = vpop.f32.mrf.mxu1 }
 0x227   :  { %v1219_v13 = vpack.c.bf16 %v1208_v38, %v1207_v25  ;;  %v1185_v47 = vadd.f32 %v1533_v49, %v1184_v42  ;;  %v1213_v44 = vmax.f32 %v1193_v50, 0.0 }
 0x228   :  { %v1912_v45 = vpop.f32.mrf.mxu1 }
 0x229   :  { %v1196_v41 = vadd.f32 %v1912_v45, %v1533_v49  ;;  %1937 = vmatprep.mubr.bf16.mxu0 %v1219_v13  ;;  %v1211_v56 = vmax.f32 %v1185_v47, 0.0 }
 0x22a   :  { %v1187_v52 = vpop.f32.mrf.mxu1  ;;  %1938 = vmatmul.mubr.bf16.gmra.mxu0 %v1220_v15 }
 0x22b   :  { %v1188_v9 = vadd.f32 %v1533_v49, %v1187_v52  ;;  %v1214_v11 = vmax.f32 %v1196_v41, 0.0 }
 0x22d   :  { %v1212_v35 = vmax.f32 %v1188_v9, 0.0  ;;  %v1222_v40 = vpack.c.bf16 %v1214_v11, %v1213_v44 }
 0x22f   :  { %v1221_v48 = vpack.c.bf16 %v1212_v35, %v1211_v56 }
 0x231   :  { %1941 = vmatprep.mubr.bf16.mxu0 %v1221_v48 }
 0x232   :  { %1942 = vmatmul.mubr.bf16.gmra.mxu0 %v1222_v40 }
 0x2d0   :  { %v1931_v27 = vpop.f32.mrf.mxu0 }
 0x2d1   :  { %v1337_v43 = vadd.f32 %v1931_v27, %v1542_v21 }
 0x2d2   :  { %v1328_v37 = vpop.f32.mrf.mxu0 }
 0x2d3   :  { %v1329_v32 = vadd.f32 %v1542_v21, %v1328_v37 }
 0x2d4   :  { %v1932_v29 = vpop.f32.mrf.mxu0 }
 0x2d5   :  { %v1340_v3 = vadd.f32 %v1932_v29, %v1542_v21 }
 0x2d6   :  { %v1331_v5 = vpop.f32.mrf.mxu0 }
 0x2d7   :  { %v1591_v46 = vpack.c.bf16 %v1340_v3, %v1337_v43  ;;  %v1332_v49 = vadd.f32 %v1542_v21, %v1331_v5 }
 0x2d9   :  { %1623 = vst [vmem:[%s2801_s7 + $0x8] sm:$0xff] %v1591_v46   ;;  %v1586_v55 = vpack.c.bf16 %v1332_v49, %v1329_v32 }
 0x2da   :  { %v1935_v59 = vpop.f32.mrf.mxu0 }
 0x2db   :  { %1587 = vst [vmem:[%s2801_s7] sm:$0xff] %v1586_v55   ;;  %v1353_v51 = vadd.f32 %v1935_v59, %v1542_v21 }
 0x2dc   :  { %v1344_v62 = vpop.f32.mrf.mxu0 }
 0x2dd   :  { %v1345_v4 = vadd.f32 %v1542_v21, %v1344_v62 }
 0x2de   :  { %v1936_v0 = vpop.f32.mrf.mxu0 }
 0x2df   :  { %v1356_v53 = vadd.f32 %v1936_v0, %v1542_v21 }
 0x2e0   :  { %v1347_v54 = vpop.f32.mrf.mxu0 }
 0x2e1   :  { %v1601_v6 = vpack.c.bf16 %v1356_v53, %v1353_v51  ;;  %v1348_v58 = vadd.f32 %v1542_v21, %v1347_v54 }
 0x2e3   :  { %1625 = vst [vmem:[%s2801_s7 + $0x18] sm:$0xff] %v1601_v6   ;;  %v1596_v61 = vpack.c.bf16 %v1348_v58, %v1345_v4 }
 0x2e5   :  { %1624 = vst [vmem:[%s2801_s7 + $0x10] sm:$0xff] %v1596_v61  }
 0x2ea   :  { %v1939_v57 = vpop.f32.mrf.mxu0 }
 0x2eb   :  { %v1369_v26 = vadd.f32 %v1939_v57, %v1542_v21 }
 0x2ec   :  { %v1360_v8 = vpop.f32.mrf.mxu0 }
 0x2ed   :  { %v1361_v2 = vadd.f32 %v1542_v21, %v1360_v8 }
 0x2ee   :  { %v1940_v30 = vpop.f32.mrf.mxu0 }
 0x2ef   :  { %v1372_v28 = vadd.f32 %v1940_v30, %v1542_v21 }
 0x2f0   :  { %v1363_v63 = vpop.f32.mrf.mxu0 }
 0x2f1   :  { %v1611_v22 = vpack.c.bf16 %v1372_v28, %v1369_v26  ;;  %v1364_v24 = vadd.f32 %v1542_v21, %v1363_v63 }
 0x2f2   :  { %v1943_v31 = vpop.f32.mrf.mxu0 }
 0x2f3   :  { %1627 = vst [vmem:[%s2801_s7 + $0x28] sm:$0xff] %v1611_v22   ;;  %v1606_v34 = vpack.c.bf16 %v1364_v24, %v1361_v2  ;;  %v1385_v16 = vadd.f32 %v1943_v31, %v1542_v21 }
 0x2f4   :  { %v1376_v12 = vpop.f32.mrf.mxu0 }
 0x2f5   :  { %1626 = vst [vmem:[%s2801_s7 + $0x20] sm:$0xff] %v1606_v34   ;;  %v1377_v20 = vadd.f32 %v1542_v21, %v1376_v12 }
 0x2f6   :  { %v1944_v14 = vpop.f32.mrf.mxu0 }
 0x2f7   :  { %v1388_v19 = vadd.f32 %v1944_v14, %v1542_v21 }
 0x2f8   :  { %v1379_v18 = vpop.f32.mrf.mxu0 }
 0x2f9   :  { %v1621_v17 = vpack.c.bf16 %v1388_v19, %v1385_v16  ;;  %v1380_v33 = vadd.f32 %v1542_v21, %v1379_v18 }
 0x2fb   :  { %1629 = vst [vmem:[%s2801_s7 + $0x38] sm:$0xff] %v1621_v17   ;;  %v1616_v7 = vpack.c.bf16 %v1380_v33, %v1377_v20 }
 0x2fd   :  { %1628 = vst [vmem:[%s2801_s7 + $0x30] sm:$0xff] %v1616_v7  }

</bundles_post_ra>
